<compile_context>
chip_gen: v7x
topology: tpu7x:2x2x1
jax: 0.10.0
libtpu: 0.0.40
codegen_flags: <defaults>
</compile_context>

<pallas_src>
import functools

import jax
import jax.numpy as jnp
from jax.experimental import pallas as pl
from jax.experimental.pallas import tpu as pltpu


LANE = 128  # TPU lane width


def _round_up(x, m):
    return ((x + m - 1) // m) * m


def mlp_kernel(x_ref, w1_ref, b1_ref, w2_ref, b2_ref, w3_ref, b3_ref, o_ref):
    """Fused 3-layer MLP on one batch tile, everything resident in VMEM.

    x:  (bt, in)        bf16
    w1: (in, Hp)  bf16, b1: (1, Hp)  f32
    w2: (Hp, Hp)  bf16, b2: (1, Hp)  f32
    w3: (Hp, Op)  bf16, b3: (1, Op)  f32
    o:  (bt, Op)        f32   (lane-dense, Op is a multiple of 128)
    """
    x = x_ref[...]

    # fc1 + ReLU (bf16 MXU inputs, f32 accumulate, f32 VPU math).
    h1 = jnp.dot(x, w1_ref[...], preferred_element_type=jnp.float32) + b1_ref[...]
    h1 = jnp.maximum(h1, 0.0).astype(jnp.bfloat16)

    # fc2 + ReLU.
    h2 = jnp.dot(h1, w2_ref[...], preferred_element_type=jnp.float32) + b2_ref[...]
    h2 = jnp.maximum(h2, 0.0).astype(jnp.bfloat16)

    # fc3 + sigmoid (sigmoid in f32; padded lanes produce sigmoid(0)=0.5 and are
    # sliced off in the wrapper).
    logits = jnp.dot(h2, w3_ref[...], preferred_element_type=jnp.float32) + b3_ref[...]
    o_ref[...] = jax.nn.sigmoid(logits).astype(o_ref.dtype)


def _prepare_padded_params(params):
    """Zero-pad feature dims to lane multiples; weights -> bf16, biases -> f32."""
    input_dim, hidden_dim = params["w1"].shape
    output_dim = params["w3"].shape[1]
    h_pad = _round_up(hidden_dim, LANE)
    o_pad = _round_up(output_dim, LANE)

    def pad2(a, rows, cols):
        return jnp.pad(a, ((0, rows - a.shape[0]), (0, cols - a.shape[1])))

    w1 = pad2(params["w1"], input_dim, h_pad).astype(jnp.bfloat16)
    b1 = pad2(params["b1"], 1, h_pad).astype(jnp.float32)
    w2 = pad2(params["w2"], h_pad, h_pad).astype(jnp.bfloat16)
    b2 = pad2(params["b2"], 1, h_pad).astype(jnp.float32)
    w3 = pad2(params["w3"], h_pad, o_pad).astype(jnp.bfloat16)
    b3 = pad2(params["b3"], 1, o_pad).astype(jnp.float32)
    return (w1, b1, w2, b2, w3, b3), h_pad, o_pad


@functools.partial(jax.jit, static_argnames=("batch_tile",))
def policy_network_forward(state, params, *, batch_tile=None):
    """PolicyNetwork forward pass via a fused Pallas TPU kernel.

    state:  (B, input_dim) float32
    params: dict with w1 (in,h), b1 (1,h), w2 (h,h), b2 (1,h), w3 (h,out), b3 (1,out)
    Returns (B, output_dim) float32 = sigmoid(relu(relu(x@w1+b1)@w2+b2)@w3+b3).
    """
    B, input_dim = state.shape
    output_dim = params["w3"].shape[1]

    (w1, b1, w2, b2, w3, b3), h_pad, o_pad = _prepare_padded_params(params)

    # Large, sublane-aligned batch tile; shrink for small batches.  1024-row
    # tiles keep double-buffered x/out + intermediates well under scoped VMEM
    # on all generations (v7x included) while amortizing per-step overhead and
    # giving the v7x megacore >=2 parallel grid steps once B > 1024.
    if batch_tile is None:
        batch_tile = min(1024, _round_up(B, 8))
    batch_tile = max(8, _round_up(batch_tile, 8))

    b_pad = _round_up(B, batch_tile)
    x = state.astype(jnp.bfloat16)
    if b_pad != B:
        x = jnp.pad(x, ((0, b_pad - B), (0, 0)))

    grid = (b_pad // batch_tile,)

    # Weights/biases are tiny and use constant block indices, so Pallas keeps
    # them resident rather than re-DMA'ing every grid step.
    def full(shape):
        return pl.BlockSpec(shape, lambda i: (0, 0))

    cost = pl.CostEstimate(
        flops=2 * b_pad * (input_dim * h_pad + h_pad * h_pad + h_pad * o_pad),
        transcendentals=b_pad * o_pad,
        bytes_accessed=(
            b_pad * input_dim * 2                      # x (bf16)
            + b_pad * o_pad * 4                        # out (f32)
            + (input_dim * h_pad + h_pad * h_pad + h_pad * o_pad) * 2  # weights
            + (2 * h_pad + o_pad) * 4                  # biases
        ),
    )

    out_padded = pl.pallas_call(
        mlp_kernel,
        out_shape=jax.ShapeDtypeStruct((b_pad, o_pad), jnp.float32),
        grid_spec=pltpu.PrefetchScalarGridSpec(
            num_scalar_prefetch=0,
            grid=grid,
            in_specs=[
                pl.BlockSpec((batch_tile, input_dim), lambda i: (i, 0)),  # x tile
                full((input_dim, h_pad)),                                 # w1
                full((1, h_pad)),                                         # b1
                full((h_pad, h_pad)),                                     # w2
                full((1, h_pad)),                                         # b2
                full((h_pad, o_pad)),                                     # w3
                full((1, o_pad)),                                         # b3
            ],
            out_specs=pl.BlockSpec((batch_tile, o_pad), lambda i: (i, 0)),
        ),
        compiler_params=pltpu.CompilerParams(
            dimension_semantics=("parallel",),
        ),
        cost_estimate=cost,
    )(x, w1, b1, w2, b2, w3, b3)

    # Strip batch and lane padding (padded lanes hold sigmoid(0)=0.5).
    return out_padded[:B, :output_dim]


def init_params(key, input_dim, hidden_dim, output_dim):
    """Deterministic init mirroring nn.Linear default: U(-1/sqrt(fan_in), +1/sqrt(fan_in))."""
    ks = jax.random.split(key, 6)

    def linear(kw, kb, fan_in, fan_out):
        bound = 1.0 / jnp.sqrt(jnp.float32(fan_in))
        w = jax.random.uniform(kw, (fan_in, fan_out), jnp.float32, -bound, bound)
        b = jax.random.uniform(kb, (1, fan_out), jnp.float32, -bound, bound)
        return w, b

    w1, b1 = linear(ks[0], ks[1], input_dim, hidden_dim)
    w2, b2 = linear(ks[2], ks[3], hidden_dim, hidden_dim)
    w3, b3 = linear(ks[4], ks[5], hidden_dim, output_dim)
    return {"w1": w1, "b1": b1, "w2": w2, "b2": b2, "w3": w3, "b3": b3}


if __name__ == "__main__":
    # Small shapes consistent with the module: state dim 16, hidden 32,
    # output 2 (alpha, beta), batch 8.
    batch, input_dim, hidden_dim, output_dim = 8, 16, 32, 2

    key = jax.random.PRNGKey(0)
    k_param, k_state = jax.random.split(key)
    params = init_params(k_param, input_dim, hidden_dim, output_dim)
    state = jax.random.normal(k_state, (batch, input_dim), jnp.float32)

    out = policy_network_forward(state, params)
    out = jax.block_until_ready(out)

    # Pure-JAX reference with the same mixed precision (bf16 inputs/weights,
    # f32 accumulate and f32 activation math).
    def ref(x, p):
        xb = x.astype(jnp.bfloat16)
        h1 = jnp.dot(xb, p["w1"].astype(jnp.bfloat16),
                     preferred_element_type=jnp.float32) + p["b1"]
        h1 = jnp.maximum(h1, 0.0).astype(jnp.bfloat16)
        h2 = jnp.dot(h1, p["w2"].astype(jnp.bfloat16),
                     preferred_element_type=jnp.float32) + p["b2"]
        h2 = jnp.maximum(h2, 0.0).astype(jnp.bfloat16)
        logits = jnp.dot(h2, p["w3"].astype(jnp.bfloat16),
                         preferred_element_type=jnp.float32) + p["b3"]
        return jax.nn.sigmoid(logits)

    expected = ref(state, params)
    assert out.shape == (batch, output_dim)
    assert jnp.allclose(out, expected, atol=2e-3, rtol=2e-3)

    print("KERNEL_OK")
</pallas_src>

<mosaic_0001>
module attributes {stable_mosaic.version = 11 : i64} {
  func.func @mlp_kernel(%arg0: i32, %arg1: memref<8x16xbf16, #tpu.memory_space<vmem>>, %arg2: memref<16x128xbf16, #tpu.memory_space<vmem>>, %arg3: memref<1x128xf32, #tpu.memory_space<vmem>>, %arg4: memref<128x128xbf16, #tpu.memory_space<vmem>>, %arg5: memref<1x128xf32, #tpu.memory_space<vmem>>, %arg6: memref<128x128xbf16, #tpu.memory_space<vmem>>, %arg7: memref<1x128xf32, #tpu.memory_space<vmem>>, %arg8: memref<8x128xf32, #tpu.memory_space<vmem>>) attributes {dimension_semantics = [#tpu.dimension_semantics<parallel>], iteration_bounds = array<i64: 1>, scalar_prefetch = 0 : i64, scratch_operands = 0 : i64, tpu.core_type = #tpu.core_type<tc>, window_params = [{transform_indices = @transform_0, window_bounds = array<i64: 8, 16>}, {pipeline_mode = #tpu.pipeline_mode<synchronous>, transform_indices = @transform_1, window_bounds = array<i64: 16, 128>}, {pipeline_mode = #tpu.pipeline_mode<synchronous>, transform_indices = @transform_2, window_bounds = array<i64: 1, 128>}, {pipeline_mode = #tpu.pipeline_mode<synchronous>, transform_indices = @transform_3, window_bounds = array<i64: 128, 128>}, {pipeline_mode = #tpu.pipeline_mode<synchronous>, transform_indices = @transform_4, window_bounds = array<i64: 1, 128>}, {pipeline_mode = #tpu.pipeline_mode<synchronous>, transform_indices = @transform_5, window_bounds = array<i64: 128, 128>}, {pipeline_mode = #tpu.pipeline_mode<synchronous>, transform_indices = @transform_6, window_bounds = array<i64: 1, 128>}, {transform_indices = @transform_7, window_bounds = array<i64: 8, 128>}]} {
    %c0 = arith.constant 0 : index
    %c0_0 = arith.constant 0 : index
    %0 = vector.load %arg1[%c0, %c0_0] : memref<8x16xbf16, #tpu.memory_space<vmem>>, vector<8x16xbf16>
    %c0_1 = arith.constant 0 : index
    %c0_2 = arith.constant 0 : index
    %1 = vector.load %arg2[%c0_1, %c0_2] : memref<16x128xbf16, #tpu.memory_space<vmem>>, vector<16x128xbf16>
    %cst = arith.constant dense<0.000000e+00> : vector<8x128xf32>
    %2 = tpu.matmul %0, %1, %cst {dimension_numbers = #tpu.dot_dimension_numbers<[1], [0], [0], [1], [0, 0, 1, 1], [], []>} : vector<8x16xbf16>, vector<16x128xbf16>, vector<8x128xf32> -> vector<8x128xf32>
    %c0_3 = arith.constant 0 : index
    %c0_4 = arith.constant 0 : index
    %3 = vector.load %arg3[%c0_3, %c0_4] : memref<1x128xf32, #tpu.memory_space<vmem>>, vector<1x128xf32>
    %4 = vector.broadcast %3 : vector<1x128xf32> to vector<8x128xf32>
    %5 = arith.addf %2, %4 : vector<8x128xf32>
    %cst_5 = arith.constant 0.000000e+00 : f32
    %6 = vector.broadcast %cst_5 : f32 to vector<8x128xf32>
    %7 = arith.maximumf %5, %6 : vector<8x128xf32>
    %8 = arith.truncf %7 : vector<8x128xf32> to vector<8x128xbf16>
    %c0_6 = arith.constant 0 : index
    %c0_7 = arith.constant 0 : index
    %9 = vector.load %arg4[%c0_6, %c0_7] : memref<128x128xbf16, #tpu.memory_space<vmem>>, vector<128x128xbf16>
    %cst_8 = arith.constant dense<0.000000e+00> : vector<8x128xf32>
    %10 = tpu.matmul %8, %9, %cst_8 {dimension_numbers = #tpu.dot_dimension_numbers<[1], [0], [0], [1], [0, 0, 1, 1], [], []>} : vector<8x128xbf16>, vector<128x128xbf16>, vector<8x128xf32> -> vector<8x128xf32>
    %c0_9 = arith.constant 0 : index
    %c0_10 = arith.constant 0 : index
    %11 = vector.load %arg5[%c0_9, %c0_10] : memref<1x128xf32, #tpu.memory_space<vmem>>, vector<1x128xf32>
    %12 = vector.broadcast %11 : vector<1x128xf32> to vector<8x128xf32>
    %13 = arith.addf %10, %12 : vector<8x128xf32>
    %cst_11 = arith.constant 0.000000e+00 : f32
    %14 = vector.broadcast %cst_11 : f32 to vector<8x128xf32>
    %15 = arith.maximumf %13, %14 : vector<8x128xf32>
    %16 = arith.truncf %15 : vector<8x128xf32> to vector<8x128xbf16>
    %c0_12 = arith.constant 0 : index
    %c0_13 = arith.constant 0 : index
    %17 = vector.load %arg6[%c0_12, %c0_13] : memref<128x128xbf16, #tpu.memory_space<vmem>>, vector<128x128xbf16>
    %cst_14 = arith.constant dense<0.000000e+00> : vector<8x128xf32>
    %18 = tpu.matmul %16, %17, %cst_14 {dimension_numbers = #tpu.dot_dimension_numbers<[1], [0], [0], [1], [0, 0, 1, 1], [], []>} : vector<8x128xbf16>, vector<128x128xbf16>, vector<8x128xf32> -> vector<8x128xf32>
    %c0_15 = arith.constant 0 : index
    %c0_16 = arith.constant 0 : index
    %19 = vector.load %arg7[%c0_15, %c0_16] : memref<1x128xf32, #tpu.memory_space<vmem>>, vector<1x128xf32>
    %20 = vector.broadcast %19 : vector<1x128xf32> to vector<8x128xf32>
    %21 = arith.addf %18, %20 : vector<8x128xf32>
    %22 = arith.negf %21 : vector<8x128xf32>
    %23 = math.exp %22 : vector<8x128xf32>
    %cst_17 = arith.constant 1.000000e+00 : f32
    %24 = vector.broadcast %cst_17 : f32 to vector<8x128xf32>
    %25 = arith.addf %24, %23 : vector<8x128xf32>
    %26 = arith.divf %24, %25 : vector<8x128xf32>
    %c0_18 = arith.constant 0 : index
    %c0_19 = arith.constant 0 : index
    %27 = vector.load %arg8[%c0_18, %c0_19] : memref<8x128xf32, #tpu.memory_space<vmem>>, vector<8x128xf32>
    tpu.vector_store %arg8[%c0_18, %c0_19], %26 {strides = array<i32>} : memref<8x128xf32, #tpu.memory_space<vmem>>, vector<8x128xf32>,
    return
  }
  func.func @transform_0(%arg0: i32) -> (i32, i32) {
    %c0_i32 = arith.constant 0 : i32
    %c0_i32_0 = arith.constant 0 : i32
    return %arg0, %c0_i32 : i32, i32
  }
  func.func @transform_1(%arg0: i32) -> (i32, i32) {
    %c0_i32 = arith.constant 0 : i32
    %c0_i32_0 = arith.constant 0 : i32
    %c0_i32_1 = arith.constant 0 : i32
    return %c0_i32, %c0_i32_0 : i32, i32
  }
  func.func @transform_2(%arg0: i32) -> (i32, i32) {
    %c0_i32 = arith.constant 0 : i32
    %c0_i32_0 = arith.constant 0 : i32
    %c0_i32_1 = arith.constant 0 : i32
    return %c0_i32, %c0_i32_0 : i32, i32
  }
  func.func @transform_3(%arg0: i32) -> (i32, i32) {
    %c0_i32 = arith.constant 0 : i32
    %c0_i32_0 = arith.constant 0 : i32
    %c0_i32_1 = arith.constant 0 : i32
    return %c0_i32, %c0_i32_0 : i32, i32
  }
  func.func @transform_4(%arg0: i32) -> (i32, i32) {
    %c0_i32 = arith.constant 0 : i32
    %c0_i32_0 = arith.constant 0 : i32
    %c0_i32_1 = arith.constant 0 : i32
    return %c0_i32, %c0_i32_0 : i32, i32
  }
  func.func @transform_5(%arg0: i32) -> (i32, i32) {
    %c0_i32 = arith.constant 0 : i32
    %c0_i32_0 = arith.constant 0 : i32
    %c0_i32_1 = arith.constant 0 : i32
    return %c0_i32, %c0_i32_0 : i32, i32
  }
  func.func @transform_6(%arg0: i32) -> (i32, i32) {
    %c0_i32 = arith.constant 0 : i32
    %c0_i32_0 = arith.constant 0 : i32
    %c0_i32_1 = arith.constant 0 : i32
    return %c0_i32, %c0_i32_0 : i32, i32
  }
  func.func @transform_7(%arg0: i32) -> (i32, i32) {
    %c0_i32 = arith.constant 0 : i32
    %c0_i32_0 = arith.constant 0 : i32
    return %arg0, %c0_i32 : i32, i32
  }
}

</mosaic_0001>

<bundles_post_ra>
// kernel: policy_network_forward.1
= control target key start
LH: loop header
LB: loop body
LE: loop exit
PB: predicated region body
PF: predicated region fallthrough
CT: control target
= control target key end

     0   :  { %v435_v0 = vmov 0.0   ;;  %vm436_vm0 = vmmov 0   ;;  %vm43_vm1 = vcmask 130048   ;;  %s563_s1 = inlined_call_operand.vmem [shape: bf16[16,128], index: 1, kind: input, shape index: {}]   ;;  %s564_s0 = inlined_call_operand.vmem [shape: bf16[8,16], index: 0, kind: input, shape index: {}]   ;;  %s565_s3 = inlined_call_operand.vmem [shape: bf16[128,128], index: 3, kind: input, shape index: {}]   ;;  %s566_s5 = inlined_call_operand.vmem [shape: bf16[128,128], index: 5, kind: input, shape index: {}]   ;;  %s567_s2 = inlined_call_operand.vmem [shape: f32[1,128], index: 2, kind: input, shape index: {}]   ;;  %s568_s4 = inlined_call_operand.vmem [shape: f32[1,128], index: 4, kind: input, shape index: {}]   ;;  %s569_s6 = inlined_call_operand.vmem [shape: f32[1,128], index: 6, kind: input, shape index: {}]   ;;  %s570_s7 = inlined_call_operand.vmem [shape: f32[8,128], index: 7, kind: output, shape index: {}]  }
   0x1   :  { %366 = vmatprep.subr.bf16.mxu0 %v435_v0  ;;  %v414_v1 = vld [vmem:[%s563_s1] sm:$0xff]   ;;  %368 = vmatprep.mubr.msk.bf16.mxu0 %vm436_vm0, %v435_v0  ;;  %v416_v4 = vld [vmem:[%s565_s3 + $0x8] sm:$0xff]   ;;  %v417_v5 = vld [vmem:[%s565_s3 + $0x10] sm:$0xff]  }
   0x2   :  { %v27_v2 = vld [vmem:[%s564_s0] sm:$0xf]  ;;  %372 = vmatprep.subr.bf16.mxu1 %v435_v0  ;;  %388 = vmatprep.mubr.msk.bf16.mxu1 %vm436_vm0, %v435_v0  ;;  %v418_v6 = vld [vmem:[%s565_s3 + $0x18] sm:$0xff]   ;;  %v420_v8 = vld [vmem:[%s565_s3 + $0x28] sm:$0xff]  }
   0x3   :  { %367 = vmatpush3.bf16.msra.mxu0 %v414_v1  ;;  %v415_v3 = vld [vmem:[%s565_s3] sm:$0xff]   ;;  %v421_v9 = vld [vmem:[%s565_s3 + $0x30] sm:$0xff]   ;;  %v422_v10 = vld [vmem:[%s565_s3 + $0x38] sm:$0xff]  }
   0x4   :  { %392 = vmatprep.subr.bf16.mxu0 %v435_v0  ;;  %373 = vmatpush3.bf16.msra.mxu1 %v415_v3  ;;  %v419_v7 = vld [vmem:[%s565_s3 + $0x20] sm:$0xff]   ;;  %v424_v12 = vld [vmem:[%s566_s5 + $0x8] sm:$0xff]   ;;  %v425_v13 = vld [vmem:[%s566_s5 + $0x10] sm:$0xff]  }
   0x5   :  { %374 = vmatprep.subr.bf16.mxu1 %v435_v0  ;;  %v423_v11 = vld [vmem:[%s566_s5] sm:$0xff]   ;;  %v426_v14 = vld [vmem:[%s566_s5 + $0x18] sm:$0xff]   ;;  %v428_v16 = vld [vmem:[%s566_s5 + $0x28] sm:$0xff]  }
   0x6   :  { %369 = vmatmul.mubr.msk.bf16.vlgmr.msra.gmra.mrb[0].mxu0 %vm43_vm1, %v27_v2  ;;  %v427_v15 = vld [vmem:[%s566_s5 + $0x20] sm:$0xff]   ;;  %v429_v25 = vld [vmem:[%s566_s5 + $0x30] sm:$0xff]   ;;  %v430_v26 = vld [vmem:[%s566_s5 + $0x38] sm:$0xff]  }
   0x7   :  { %408 = vmatprep.mubr.msk.bf16.mxu0 %vm436_vm0, %v435_v0  ;;  %393 = vmatpush3.bf16.msra.mxu0 %v423_v11  ;;  %v324_v17 = vld [vmem:[%s567_s2] ss:$0 sm:$0xff] }
   0x8   :  { %375 = vmatpush3.bf16.msra.mxu1 %v416_v4  ;;  %394 = vmatprep.subr.bf16.mxu0 %v435_v0  ;;  %v327_v27 = vld [vmem:[%s568_s4] ss:$0 sm:$0xff] }
   0x9   :  { %376 = vmatprep.subr.bf16.mxu1 %v435_v0  ;;  %v336_v35 = vld [vmem:[%s569_s6] ss:$0 sm:$0xff] }
   0xb   :  { %395 = vmatpush3.bf16.msra.mxu0 %v424_v12 }
   0xc   :  { %377 = vmatpush3.bf16.msra.mxu1 %v417_v5  ;;  %396 = vmatprep.subr.bf16.mxu0 %v435_v0 }
   0xd   :  { %378 = vmatprep.subr.bf16.mxu1 %v435_v0 }
   0xf   :  { %397 = vmatpush3.bf16.msra.mxu0 %v425_v13 }
  0x10   :  { %379 = vmatpush3.bf16.msra.mxu1 %v418_v6  ;;  %398 = vmatprep.subr.bf16.mxu0 %v435_v0 }
  0x11   :  { %380 = vmatprep.subr.bf16.mxu1 %v435_v0 }
  0x13   :  { %399 = vmatpush3.bf16.msra.mxu0 %v426_v14 }
  0x14   :  { %381 = vmatpush3.bf16.msra.mxu1 %v419_v7  ;;  %400 = vmatprep.subr.bf16.mxu0 %v435_v0 }
  0x15   :  { %382 = vmatprep.subr.bf16.mxu1 %v435_v0 }
  0x17   :  { %401 = vmatpush3.bf16.msra.mxu0 %v427_v15 }
  0x18   :  { %383 = vmatpush3.bf16.msra.mxu1 %v420_v8  ;;  %402 = vmatprep.subr.bf16.mxu0 %v435_v0 }
  0x19   :  { %384 = vmatprep.subr.bf16.mxu1 %v435_v0 }
  0x1b   :  { %403 = vmatpush3.bf16.msra.mxu0 %v428_v16 }
  0x1c   :  { %385 = vmatpush3.bf16.msra.mxu1 %v421_v9  ;;  %404 = vmatprep.subr.bf16.mxu0 %v435_v0 }
  0x1d   :  { %386 = vmatprep.subr.bf16.mxu1 %v435_v0 }
  0x1f   :  { %405 = vmatpush3.bf16.msra.mxu0 %v429_v25 }
  0x20   :  { %387 = vmatpush3.bf16.msra.mxu1 %v422_v10  ;;  %406 = vmatprep.subr.bf16.mxu0 %v435_v0 }
  0x23   :  { %407 = vmatpush3.bf16.msra.mxu0 %v430_v26 }
  0xd9   :  { %v81_v18 = vpop.f32.mrb[0].mxu0 }
  0xda   :  { %v82_v19 = vadd.f32 %v324_v17, %v81_v18  ;;  %v370_v20 = vpop.f32.mrb[1].mxu0 }
  0xdb   :  { %v84_v21 = vpop.f32.mrb[2].mxu0 }
  0xdc   :  { %v87_v22 = vmax.f32 %v82_v19, 0.0  ;;  %v371_v23 = vpop.f32.mrb[3].mxu0 }
  0xde   :  { %v88_v24 = vpack.c.bf16 %v87_v22, %v87_v22 }
  0xe0   :  { %389 = vmatmul.mubr.bf16.vlgmr.msra.gmra.mrb[0].mxu1 %v88_v24 }
 0x1b3   :  { %v194_v28 = vpop.f32.mrb[0].mxu1 }
 0x1b4   :  { %v195_v29 = vadd.f32 %v327_v27, %v194_v28  ;;  %v390_v30 = vpop.f32.mrb[1].mxu1 }
 0x1b5   :  { %v197_v31 = vpop.f32.mrb[2].mxu1 }
 0x1b6   :  { %v200_v32 = vmax.f32 %v195_v29, 0.0  ;;  %v391_v33 = vpop.f32.mrb[3].mxu1 }
 0x1b8   :  { %v201_v34 = vpack.c.bf16 %v200_v32, %v200_v32 }
 0x1ba   :  { %409 = vmatmul.mubr.bf16.vlgmr.msra.gmra.mrb[4].mxu0 %v201_v34 }
 0x28d   :  { %v307_v36 = vpop.f32.mrb[4].mxu0 }
 0x28e   :  { %v308_v37 = vadd.f32 %v336_v35, %v307_v36  ;;  %v410_v38 = vpop.f32.mrb[5].mxu0 }
 0x28f   :  { %v310_v39 = vpop.f32.mrb[6].mxu0 }
 0x290   :  { %v345_v40 = vmul.f32 -1.442695, %v308_v37  ;;  %v411_v41 = vpop.f32.mrb[7].mxu0 }
 0x292   :  { %431 = vpow2.f32 %v345_v40 }
 0x29c   :  { %v432_v42 = vpop.eup %431 }
 0x29d   :  { %v316_v43 = vadd.f32 1.0, %v432_v42 }
 0x29f   :  { %433 = vrcp.f32 %v316_v43 }
 0x2a9   :  { %v434_v44 = vpop.eup %433 }
 0x2aa   :  { %319 = vst [vmem:[%s570_s7] sm:$0xff] %v434_v44 }

</bundles_post_ra>
